<compile_context>
chip_gen: v7x
topology: tpu7x:2x2x1
jax: 0.10.0
libtpu: 0.0.40
codegen_flags: <defaults>
</compile_context>

<pallas_src>
import functools

import jax
import jax.numpy as jnp
from jax.experimental import pallas as pl
from jax.experimental.pallas import tpu as pltpu

LANE = 128      # vreg lane width
SUBLANE = 8     # vreg sublane count


def _round_up(x, m):
    return ((x + m - 1) // m) * m


# ----------------------------------------------------------------------------
# Fused kernel: gcn1 -> relu -> gcn2 -> relu -> gather -> constraints -> heads
# ----------------------------------------------------------------------------
def _fused_kernel(num_actions,
                  idx_ref,                                     # SMEM (BP,) i32
                  a_ref, xw1_ref, b1_ref, w2_ref, b2_ref,      # bf16 / f32 bias
                  mask_ref, wc_ref, bc_ref,
                  wh_emb_ref, wh_c_ref, bh_ref,
                  out_ref,
                  h2_ref, emb_ref):                            # VMEM scratch
    f32 = jnp.float32
    bf16 = jnp.bfloat16

    # --- GCN layer 1: h1 = relu(A_norm @ (X @ W1) + b1) ----------------------
    # XW1 is precomputed per graph (call-invariant); bf16 in, f32 accumulate.
    h1 = jnp.maximum(
        jnp.dot(a_ref[...], xw1_ref[...], preferred_element_type=f32)
        + b1_ref[...], 0.0)

    # --- GCN layer 2: h2 = relu(A_norm @ (h1 @ W2) + b2) ---------------------
    hw = jnp.dot(h1.astype(bf16), w2_ref[...], preferred_element_type=f32)
    h2 = jnp.maximum(
        jnp.dot(a_ref[...], hw.astype(bf16), preferred_element_type=f32)
        + b2_ref[...], 0.0)
    h2_ref[...] = h2

    # --- Gather current-node embeddings: BP dynamic row reads (idx in SMEM) --
    bp = emb_ref.shape[0]
    for b in range(bp):                       # static unroll, bp == 8
        emb_ref[pl.ds(b, 1), :] = h2_ref[pl.ds(idx_ref[b], 1), :]

    # --- Constraints branch: c = relu(mask @ Wc + bc) ------------------------
    mask_f = mask_ref[...]                                    # (BP, OUT) f32 0/1
    c = jnp.maximum(
        jnp.dot(mask_f.astype(bf16), wc_ref[...], preferred_element_type=f32)
        + bc_ref[...], 0.0)

    # --- Actor + critic packed into one lane-dense (BP, OUT) block -----------
    # policy_inputs = concat([emb, c], -1) realised by splitting the packed
    # head weight into its emb-part and c-part (two matmuls, no lane concat).
    emb = emb_ref[...]
    head = (jnp.dot(emb.astype(bf16), wh_emb_ref[...], preferred_element_type=f32)
            + jnp.dot(c.astype(bf16), wh_c_ref[...], preferred_element_type=f32)
            + bh_ref[...])

    # Mask invalid actions (columns < num_actions) with -1e6; keep the vpred
    # column (== num_actions) and the zero padding untouched.
    out_col = jax.lax.broadcasted_iota(jnp.int32, head.shape, 1)
    keep = (mask_f > 0.0) | (out_col >= num_actions)
    out_ref[...] = jnp.where(keep, head, -1000000.0)


def _fused_call(packed, a_bf16, xw1_bf16, idx_pad, mask_pad, num_actions):
    n = a_bf16.shape[0]
    hp = xw1_bf16.shape[1]
    bp, out_w = mask_pad.shape

    operands = (a_bf16, xw1_bf16, packed["b1"], packed["w2"], packed["b2"],
                mask_pad, packed["wc"], packed["bc"],
                packed["wh_emb"], packed["wh_c"], packed["bh"])

    def full(shape):
        # Full-array block; index_map receives (grid_idx, *prefetch_refs).
        return pl.BlockSpec(shape, lambda i, idx: (0, 0))

    flops = 2 * (n * n * hp            # A @ (X W1)
                 + n * hp * hp         # h1 @ W2
                 + n * n * hp          # A @ (h1 W2)
                 + bp * out_w * hp     # mask @ Wc
                 + 2 * bp * hp * out_w)  # head matmuls
    op_bytes = int(sum(op.size * op.dtype.itemsize for op in operands)
                   + idx_pad.size * 4)
    out_bytes = bp * out_w * 4
    scratch_bytes = (n * hp + bp * hp) * 4
    # Explicit scoped-VMEM budget (double-buffered operands + scratch + slack),
    # clamped so it is safe on v5e (16 MiB default) and v7x (64 MiB physical).
    vmem_limit = int(min(64 << 20,
                         max(16 << 20,
                             2 * (op_bytes + out_bytes) + scratch_bytes
                             + (4 << 20))))

    grid_spec = pltpu.PrefetchScalarGridSpec(
        num_scalar_prefetch=1,                  # current-node indices -> SMEM
        grid=(1,),
        in_specs=[full(op.shape) for op in operands],
        out_specs=full((bp, out_w)),
        scratch_shapes=[pltpu.VMEM((n, hp), jnp.float32),    # h2 scratch
                        pltpu.VMEM((bp, hp), jnp.float32)])  # gathered emb

    return pl.pallas_call(
        functools.partial(_fused_kernel, num_actions),
        out_shape=jax.ShapeDtypeStruct((bp, out_w), jnp.float32),
        grid_spec=grid_spec,
        compiler_params=pltpu.CompilerParams(
            dimension_semantics=("arbitrary",),
            vmem_limit_bytes=vmem_limit),
        cost_estimate=pl.CostEstimate(flops=flops, transcendentals=0,
                                      bytes_accessed=op_bytes + out_bytes),
    )(idx_pad, *operands)


# ----------------------------------------------------------------------------
# Glue: adjacency normalization, parameter init / packing, graph precompute
# ----------------------------------------------------------------------------
def build_normalized_adjacency(edge_index, num_nodes):
    """Dense D^{-1/2} (A + I) D^{-1/2}, matching torch_geometric GCNConv.

    edge_index[0] = source, edge_index[1] = target; A[target, source] = 1.
    (Duplicate edges sum, same as scatter-add message passing.)
    """
    src, dst = edge_index[0], edge_index[1]
    a = jnp.zeros((num_nodes, num_nodes), jnp.float32)
    a = a.at[dst, src].add(1.0)
    a = a + jnp.eye(num_nodes, dtype=jnp.float32)            # self loops
    deg = jnp.sum(a, axis=1)
    d_inv_sqrt = jnp.where(deg > 0, 1.0 / jnp.sqrt(deg), 0.0)
    return d_inv_sqrt[:, None] * a * d_inv_sqrt[None, :]


def _linear_params(key, fan_in, fan_out, bias=True):
    kw, kb = jax.random.split(key)
    bound = 1.0 / jnp.sqrt(float(fan_in))
    w = jax.random.uniform(kw, (fan_in, fan_out), jnp.float32, -bound, bound)
    b = (jax.random.uniform(kb, (fan_out,), jnp.float32, -bound, bound)
         if bias else jnp.zeros((fan_out,), jnp.float32))
    return w, b


def init_params(key, node_dim, hidden_dim, num_actions):
    ks = jax.random.split(key, 5)
    w1, b1 = _linear_params(ks[0], node_dim, hidden_dim)         # gcn1
    w2, b2 = _linear_params(ks[1], hidden_dim, hidden_dim)       # gcn2
    wc, bc = _linear_params(ks[2], num_actions, hidden_dim)      # constraints
    wa, ba = _linear_params(ks[3], hidden_dim * 2, num_actions)  # actor
    wv, bv = _linear_params(ks[4], hidden_dim * 2, 1)            # critic
    return dict(w1=w1, b1=b1, w2=w2, b2=b2, wc=wc, bc=bc,
                wa=wa, ba=ba, wv=wv, bv=bv)


def pack_params(params, node_dim, hidden_dim, num_actions):
    """Pad weights once to lane-dense tiles, cast weights to bf16 (biases stay
    f32 for the VPU path), and pack actor+critic into one head.

    Packed head layout: columns [0:num_actions] = actor, column num_actions =
    critic, remaining lanes zero.  Done once, outside the per-call path.
    """
    hp = _round_up(hidden_dim, LANE)
    out_w = _round_up(num_actions + 1, LANE)   # logits + vpred column, padded
    ap = out_w                                 # padded mask/action width

    def pad2(w, rows, cols, dtype):
        return (jnp.zeros((rows, cols), jnp.float32)
                .at[:w.shape[0], :w.shape[1]].set(w).astype(dtype))

    b1 = pad2(params["b1"].reshape(1, -1), 1, hp, jnp.float32)
    w2 = pad2(params["w2"], hp, hp, jnp.bfloat16)
    b2 = pad2(params["b2"].reshape(1, -1), 1, hp, jnp.float32)
    wc = pad2(params["wc"], ap, hp, jnp.bfloat16)
    bc = pad2(params["bc"].reshape(1, -1), 1, hp, jnp.float32)

    wh = jnp.zeros((2 * hidden_dim, out_w), jnp.float32)
    wh = wh.at[:, :num_actions].set(params["wa"])
    wh = wh.at[:, num_actions:num_actions + 1].set(params["wv"])
    wh_emb = pad2(wh[:hidden_dim], hp, out_w, jnp.bfloat16)
    wh_c = pad2(wh[hidden_dim:], hp, out_w, jnp.bfloat16)
    bh = jnp.zeros((1, out_w), jnp.float32)
    bh = bh.at[0, :num_actions].set(params["ba"])
    bh = bh.at[0, num_actions].set(params["bv"][0])

    return dict(b1=b1, w2=w2, b2=b2, wc=wc, bc=bc,
                wh_emb=wh_emb, wh_c=wh_c, bh=bh)


def preprocess_graph(params, node_features, a_norm):
    """Per-graph, call-invariant precompute: bf16 A_norm and XW1 = X @ W1.

    X and W1 do not depend on the per-step inputs (current_node_idx /
    action_masks), so the first GCN matmul is hoisted out of the per-call
    kernel; the kernel only sees lane-dense bf16 tiles.
    """
    hidden = params["w1"].shape[1]
    hp = _round_up(hidden, LANE)
    n = node_features.shape[0]
    xw1 = node_features @ params["w1"]                       # f32 precompute
    xw1_pad = jnp.zeros((n, hp), jnp.float32).at[:, :hidden].set(xw1)
    return a_norm.astype(jnp.bfloat16), xw1_pad.astype(jnp.bfloat16)


@jax.jit
def gnn_policy_forward(packed_params, a_norm_bf16, xw1_bf16,
                       current_node_idx, action_masks, sample_key):
    batch = current_node_idx.shape[0]
    num_actions = action_masks.shape[1]
    bp = _round_up(max(batch, 1), SUBLANE)
    out_w = packed_params["bh"].shape[1]

    # Pad the tiny per-call inputs: mask to one lane-dense (8, 128) tile and
    # indices to one SMEM-resident (8,) int32 vector.
    mask_f = action_masks.astype(jnp.float32)
    mask_pad = (jnp.zeros((bp, out_w), jnp.float32)
                .at[:batch, :num_actions].set(mask_f))
    idx_pad = (jnp.zeros((bp,), jnp.int32)
               .at[:batch].set(current_node_idx.astype(jnp.int32)))

    out = _fused_call(packed_params, a_norm_bf16, xw1_bf16, idx_pad, mask_pad,
                      num_actions)

    logits = out[:batch, :num_actions]
    vpred = out[:batch, num_actions]

    # torch.distributions.Categorical: sample + log_prob (plain-JAX glue).
    act = jax.random.categorical(sample_key, logits, axis=-1)
    log_probs = jax.nn.log_softmax(logits, axis=-1)
    logp = jnp.take_along_axis(log_probs, act[:, None], axis=-1)[:, 0]
    return {"logits": logits, "act": act, "logp": logp, "vpred": vpred}


# ----------------------------------------------------------------------------
# Pure-JAX f32 reference (for correctness check of the deterministic outputs)
# ----------------------------------------------------------------------------
def _reference(params, node_features, a_norm, current_node_idx, action_masks):
    x = jnp.maximum(a_norm @ (node_features @ params["w1"]) + params["b1"], 0.0)
    x = jnp.maximum(a_norm @ (x @ params["w2"]) + params["b2"], 0.0)
    emb = x[current_node_idx]
    mask_f = action_masks.astype(jnp.float32)
    c = jnp.maximum(mask_f @ params["wc"] + params["bc"], 0.0)
    pol = jnp.concatenate([emb, c], axis=1)
    logits = pol @ params["wa"] + params["ba"]
    logits = jnp.where(action_masks, logits, -1000000.0)
    vpred = (pol @ params["wv"] + params["bv"])[:, 0]
    return logits, vpred


# ----------------------------------------------------------------------------
# Example run
# ----------------------------------------------------------------------------
if __name__ == "__main__":
    node_dim, hidden_dim, num_actions = 8, 32, 8
    num_nodes, batch = 16, 2

    key = jax.random.PRNGKey(0)
    k_param, k_feat, k_mask, k_sample = jax.random.split(key, 4)

    params = init_params(k_param, node_dim, hidden_dim, num_actions)
    packed = pack_params(params, node_dim, hidden_dim, num_actions)

    node_features = jax.random.normal(k_feat, (num_nodes, node_dim), jnp.float32)

    # A small binary tree: edges child -> parent and parent -> child.
    children = jnp.arange(1, num_nodes, dtype=jnp.int32)
    parents = (children - 1) // 2
    edge_index = jnp.stack([jnp.concatenate([children, parents]),
                            jnp.concatenate([parents, children])], axis=0)
    a_norm = build_normalized_adjacency(edge_index, num_nodes)       # f32 ref
    a_norm_bf16, xw1_bf16 = preprocess_graph(params, node_features, a_norm)

    current_node_idx = jnp.array([3, 7], dtype=jnp.int32)
    action_masks = jax.random.bernoulli(k_mask, 0.6, (batch, num_actions))
    action_masks = action_masks.at[:, 0].set(True)   # >=1 valid action per row

    out = gnn_policy_forward(packed, a_norm_bf16, xw1_bf16, current_node_idx,
                             action_masks, k_sample)
    jax.block_until_ready(out)

    assert out["logits"].shape == (batch, num_actions)
    assert out["act"].shape == (batch,)
    assert out["logp"].shape == (batch,)
    assert out["vpred"].shape == (batch,)

    ref_logits, ref_vpred = _reference(params, node_features, a_norm,
                                       current_node_idx, action_masks)
    # bf16 matmul operands (f32 accumulation) lose ~3 decimal digits vs the
    # pure-f32 reference; 2e-2 tolerance covers the two aggregation layers.
    assert jnp.allclose(out["logits"], ref_logits, rtol=2e-2, atol=2e-2)
    assert jnp.allclose(out["vpred"], ref_vpred, rtol=2e-2, atol=2e-2)

    print("KERNEL_OK")
</pallas_src>

<mosaic_0001>
module attributes {stable_mosaic.version = 11 : i64} {
  func.func @_fused_kernel(%arg0: i32, %arg1: memref<8xi32, #tpu.memory_space<smem>>, %arg2: memref<16x16xbf16, #tpu.memory_space<vmem>>, %arg3: memref<16x128xbf16, #tpu.memory_space<vmem>>, %arg4: memref<1x128xf32, #tpu.memory_space<vmem>>, %arg5: memref<128x128xbf16, #tpu.memory_space<vmem>>, %arg6: memref<1x128xf32, #tpu.memory_space<vmem>>, %arg7: memref<8x128xf32, #tpu.memory_space<vmem>>, %arg8: memref<128x128xbf16, #tpu.memory_space<vmem>>, %arg9: memref<1x128xf32, #tpu.memory_space<vmem>>, %arg10: memref<128x128xbf16, #tpu.memory_space<vmem>>, %arg11: memref<128x128xbf16, #tpu.memory_space<vmem>>, %arg12: memref<1x128xf32, #tpu.memory_space<vmem>>, %arg13: memref<8x128xf32, #tpu.memory_space<vmem>>, %arg14: memref<16x128xf32, #tpu.memory_space<vmem>>, %arg15: memref<8x128xf32, #tpu.memory_space<vmem>>) attributes {dimension_semantics = [#tpu.dimension_semantics<arbitrary>], iteration_bounds = array<i64: 1>, scalar_prefetch = 1 : i64, scratch_operands = 2 : i64, tpu.core_type = #tpu.core_type<tc>, window_params = [{pipeline_mode = #tpu.pipeline_mode<synchronous>, transform_indices = @transform_0, window_bounds = array<i64: 16, 16>}, {pipeline_mode = #tpu.pipeline_mode<synchronous>, transform_indices = @transform_1, window_bounds = array<i64: 16, 128>}, {pipeline_mode = #tpu.pipeline_mode<synchronous>, transform_indices = @transform_2, window_bounds = array<i64: 1, 128>}, {pipeline_mode = #tpu.pipeline_mode<synchronous>, transform_indices = @transform_3, window_bounds = array<i64: 128, 128>}, {pipeline_mode = #tpu.pipeline_mode<synchronous>, transform_indices = @transform_4, window_bounds = array<i64: 1, 128>}, {pipeline_mode = #tpu.pipeline_mode<synchronous>, transform_indices = @transform_5, window_bounds = array<i64: 8, 128>}, {pipeline_mode = #tpu.pipeline_mode<synchronous>, transform_indices = @transform_6, window_bounds = array<i64: 128, 128>}, {pipeline_mode = #tpu.pipeline_mode<synchronous>, transform_indices = @transform_7, window_bounds = array<i64: 1, 128>}, {pipeline_mode = #tpu.pipeline_mode<synchronous>, transform_indices = @transform_8, window_bounds = array<i64: 128, 128>}, {pipeline_mode = #tpu.pipeline_mode<synchronous>, transform_indices = @transform_9, window_bounds = array<i64: 128, 128>}, {pipeline_mode = #tpu.pipeline_mode<synchronous>, transform_indices = @transform_10, window_bounds = array<i64: 1, 128>}, {pipeline_mode = #tpu.pipeline_mode<synchronous>, transform_indices = @transform_11, window_bounds = array<i64: 8, 128>}]} {
    %c0 = arith.constant 0 : index
    %c0_0 = arith.constant 0 : index
    %0 = vector.load %arg2[%c0, %c0_0] : memref<16x16xbf16, #tpu.memory_space<vmem>>, vector<16x16xbf16>
    %c0_1 = arith.constant 0 : index
    %c0_2 = arith.constant 0 : index
    %1 = vector.load %arg3[%c0_1, %c0_2] : memref<16x128xbf16, #tpu.memory_space<vmem>>, vector<16x128xbf16>
    %cst = arith.constant dense<0.000000e+00> : vector<16x128xf32>
    %2 = tpu.matmul %0, %1, %cst {dimension_numbers = #tpu.dot_dimension_numbers<[1], [0], [0], [1], [0, 0, 1, 1], [], []>} : vector<16x16xbf16>, vector<16x128xbf16>, vector<16x128xf32> -> vector<16x128xf32>
    %c0_3 = arith.constant 0 : index
    %c0_4 = arith.constant 0 : index
    %3 = vector.load %arg4[%c0_3, %c0_4] : memref<1x128xf32, #tpu.memory_space<vmem>>, vector<1x128xf32>
    %4 = vector.broadcast %3 : vector<1x128xf32> to vector<16x128xf32>
    %5 = arith.addf %2, %4 : vector<16x128xf32>
    %cst_5 = arith.constant 0.000000e+00 : f32
    %6 = vector.broadcast %cst_5 : f32 to vector<16x128xf32>
    %7 = arith.maximumf %5, %6 : vector<16x128xf32>
    %8 = arith.truncf %7 : vector<16x128xf32> to vector<16x128xbf16>
    %c0_6 = arith.constant 0 : index
    %c0_7 = arith.constant 0 : index
    %9 = vector.load %arg5[%c0_6, %c0_7] : memref<128x128xbf16, #tpu.memory_space<vmem>>, vector<128x128xbf16>
    %cst_8 = arith.constant dense<0.000000e+00> : vector<16x128xf32>
    %10 = tpu.matmul %8, %9, %cst_8 {dimension_numbers = #tpu.dot_dimension_numbers<[1], [0], [0], [1], [0, 0, 1, 1], [], []>} : vector<16x128xbf16>, vector<128x128xbf16>, vector<16x128xf32> -> vector<16x128xf32>
    %c0_9 = arith.constant 0 : index
    %c0_10 = arith.constant 0 : index
    %11 = vector.load %arg2[%c0_9, %c0_10] : memref<16x16xbf16, #tpu.memory_space<vmem>>, vector<16x16xbf16>
    %12 = arith.truncf %10 : vector<16x128xf32> to vector<16x128xbf16>
    %cst_11 = arith.constant dense<0.000000e+00> : vector<16x128xf32>
    %13 = tpu.matmul %11, %12, %cst_11 {dimension_numbers = #tpu.dot_dimension_numbers<[1], [0], [0], [1], [0, 0, 1, 1], [], []>} : vector<16x16xbf16>, vector<16x128xbf16>, vector<16x128xf32> -> vector<16x128xf32>
    %c0_12 = arith.constant 0 : index
    %c0_13 = arith.constant 0 : index
    %14 = vector.load %arg6[%c0_12, %c0_13] : memref<1x128xf32, #tpu.memory_space<vmem>>, vector<1x128xf32>
    %15 = vector.broadcast %14 : vector<1x128xf32> to vector<16x128xf32>
    %16 = arith.addf %13, %15 : vector<16x128xf32>
    %cst_14 = arith.constant 0.000000e+00 : f32
    %17 = vector.broadcast %cst_14 : f32 to vector<16x128xf32>
    %18 = arith.maximumf %16, %17 : vector<16x128xf32>
    %c0_15 = arith.constant 0 : index
    %c0_16 = arith.constant 0 : index
    %19 = vector.load %arg14[%c0_15, %c0_16] : memref<16x128xf32, #tpu.memory_space<vmem>>, vector<16x128xf32>
    tpu.vector_store %arg14[%c0_15, %c0_16], %18 {strides = array<i32>} : memref<16x128xf32, #tpu.memory_space<vmem>>, vector<16x128xf32>,
    %c0_17 = arith.constant 0 : index
    %20 = memref.load %arg1[%c0_17] : memref<8xi32, #tpu.memory_space<smem>>
    %21 = arith.index_cast %20 : i32 to index
    %c0_18 = arith.constant 0 : index
    %22 = vector.load %arg14[%21, %c0_18] : memref<16x128xf32, #tpu.memory_space<vmem>>, vector<1x128xf32>
    %c0_19 = arith.constant 0 : index
    %c0_20 = arith.constant 0 : index
    %23 = vector.load %arg15[%c0_19, %c0_20] : memref<8x128xf32, #tpu.memory_space<vmem>>, vector<1x128xf32>
    tpu.vector_store %arg15[%c0_19, %c0_20], %22 {strides = array<i32>} : memref<8x128xf32, #tpu.memory_space<vmem>>, vector<1x128xf32>,
    %c1 = arith.constant 1 : index
    %24 = memref.load %arg1[%c1] : memref<8xi32, #tpu.memory_space<smem>>
    %25 = arith.index_cast %24 : i32 to index
    %c0_21 = arith.constant 0 : index
    %26 = vector.load %arg14[%25, %c0_21] : memref<16x128xf32, #tpu.memory_space<vmem>>, vector<1x128xf32>
    %c1_22 = arith.constant 1 : index
    %c0_23 = arith.constant 0 : index
    %27 = vector.load %arg15[%c1_22, %c0_23] : memref<8x128xf32, #tpu.memory_space<vmem>>, vector<1x128xf32>
    tpu.vector_store %arg15[%c1_22, %c0_23], %26 {strides = array<i32>} : memref<8x128xf32, #tpu.memory_space<vmem>>, vector<1x128xf32>,
    %c2 = arith.constant 2 : index
    %28 = memref.load %arg1[%c2] : memref<8xi32, #tpu.memory_space<smem>>
    %29 = arith.index_cast %28 : i32 to index
    %c0_24 = arith.constant 0 : index
    %30 = vector.load %arg14[%29, %c0_24] : memref<16x128xf32, #tpu.memory_space<vmem>>, vector<1x128xf32>
    %c2_25 = arith.constant 2 : index
    %c0_26 = arith.constant 0 : index
    %31 = vector.load %arg15[%c2_25, %c0_26] : memref<8x128xf32, #tpu.memory_space<vmem>>, vector<1x128xf32>
    tpu.vector_store %arg15[%c2_25, %c0_26], %30 {strides = array<i32>} : memref<8x128xf32, #tpu.memory_space<vmem>>, vector<1x128xf32>,
    %c3 = arith.constant 3 : index
    %32 = memref.load %arg1[%c3] : memref<8xi32, #tpu.memory_space<smem>>
    %33 = arith.index_cast %32 : i32 to index
    %c0_27 = arith.constant 0 : index
    %34 = vector.load %arg14[%33, %c0_27] : memref<16x128xf32, #tpu.memory_space<vmem>>, vector<1x128xf32>
    %c3_28 = arith.constant 3 : index
    %c0_29 = arith.constant 0 : index
    %35 = vector.load %arg15[%c3_28, %c0_29] : memref<8x128xf32, #tpu.memory_space<vmem>>, vector<1x128xf32>
    tpu.vector_store %arg15[%c3_28, %c0_29], %34 {strides = array<i32>} : memref<8x128xf32, #tpu.memory_space<vmem>>, vector<1x128xf32>,
    %c4 = arith.constant 4 : index
    %36 = memref.load %arg1[%c4] : memref<8xi32, #tpu.memory_space<smem>>
    %37 = arith.index_cast %36 : i32 to index
    %c0_30 = arith.constant 0 : index
    %38 = vector.load %arg14[%37, %c0_30] : memref<16x128xf32, #tpu.memory_space<vmem>>, vector<1x128xf32>
    %c4_31 = arith.constant 4 : index
    %c0_32 = arith.constant 0 : index
    %39 = vector.load %arg15[%c4_31, %c0_32] : memref<8x128xf32, #tpu.memory_space<vmem>>, vector<1x128xf32>
    tpu.vector_store %arg15[%c4_31, %c0_32], %38 {strides = array<i32>} : memref<8x128xf32, #tpu.memory_space<vmem>>, vector<1x128xf32>,
    %c5 = arith.constant 5 : index
    %40 = memref.load %arg1[%c5] : memref<8xi32, #tpu.memory_space<smem>>
    %41 = arith.index_cast %40 : i32 to index
    %c0_33 = arith.constant 0 : index
    %42 = vector.load %arg14[%41, %c0_33] : memref<16x128xf32, #tpu.memory_space<vmem>>, vector<1x128xf32>
    %c5_34 = arith.constant 5 : index
    %c0_35 = arith.constant 0 : index
    %43 = vector.load %arg15[%c5_34, %c0_35] : memref<8x128xf32, #tpu.memory_space<vmem>>, vector<1x128xf32>
    tpu.vector_store %arg15[%c5_34, %c0_35], %42 {strides = array<i32>} : memref<8x128xf32, #tpu.memory_space<vmem>>, vector<1x128xf32>,
    %c6 = arith.constant 6 : index
    %44 = memref.load %arg1[%c6] : memref<8xi32, #tpu.memory_space<smem>>
    %45 = arith.index_cast %44 : i32 to index
    %c0_36 = arith.constant 0 : index
    %46 = vector.load %arg14[%45, %c0_36] : memref<16x128xf32, #tpu.memory_space<vmem>>, vector<1x128xf32>
    %c6_37 = arith.constant 6 : index
    %c0_38 = arith.constant 0 : index
    %47 = vector.load %arg15[%c6_37, %c0_38] : memref<8x128xf32, #tpu.memory_space<vmem>>, vector<1x128xf32>
    tpu.vector_store %arg15[%c6_37, %c0_38], %46 {strides = array<i32>} : memref<8x128xf32, #tpu.memory_space<vmem>>, vector<1x128xf32>,
    %c7 = arith.constant 7 : index
    %48 = memref.load %arg1[%c7] : memref<8xi32, #tpu.memory_space<smem>>
    %49 = arith.index_cast %48 : i32 to index
    %c0_39 = arith.constant 0 : index
    %50 = vector.load %arg14[%49, %c0_39] : memref<16x128xf32, #tpu.memory_space<vmem>>, vector<1x128xf32>
    %c7_40 = arith.constant 7 : index
    %c0_41 = arith.constant 0 : index
    %51 = vector.load %arg15[%c7_40, %c0_41] : memref<8x128xf32, #tpu.memory_space<vmem>>, vector<1x128xf32>
    tpu.vector_store %arg15[%c7_40, %c0_41], %50 {strides = array<i32>} : memref<8x128xf32, #tpu.memory_space<vmem>>, vector<1x128xf32>,
    %c0_42 = arith.constant 0 : index
    %c0_43 = arith.constant 0 : index
    %52 = vector.load %arg7[%c0_42, %c0_43] : memref<8x128xf32, #tpu.memory_space<vmem>>, vector<8x128xf32>
    %53 = arith.truncf %52 : vector<8x128xf32> to vector<8x128xbf16>
    %c0_44 = arith.constant 0 : index
    %c0_45 = arith.constant 0 : index
    %54 = vector.load %arg8[%c0_44, %c0_45] : memref<128x128xbf16, #tpu.memory_space<vmem>>, vector<128x128xbf16>
    %cst_46 = arith.constant dense<0.000000e+00> : vector<8x128xf32>
    %55 = tpu.matmul %53, %54, %cst_46 {dimension_numbers = #tpu.dot_dimension_numbers<[1], [0], [0], [1], [0, 0, 1, 1], [], []>} : vector<8x128xbf16>, vector<128x128xbf16>, vector<8x128xf32> -> vector<8x128xf32>
    %c0_47 = arith.constant 0 : index
    %c0_48 = arith.constant 0 : index
    %56 = vector.load %arg9[%c0_47, %c0_48] : memref<1x128xf32, #tpu.memory_space<vmem>>, vector<1x128xf32>
    %57 = vector.broadcast %56 : vector<1x128xf32> to vector<8x128xf32>
    %58 = arith.addf %55, %57 : vector<8x128xf32>
    %cst_49 = arith.constant 0.000000e+00 : f32
    %59 = vector.broadcast %cst_49 : f32 to vector<8x128xf32>
    %60 = arith.maximumf %58, %59 : vector<8x128xf32>
    %c0_50 = arith.constant 0 : index
    %c0_51 = arith.constant 0 : index
    %61 = vector.load %arg15[%c0_50, %c0_51] : memref<8x128xf32, #tpu.memory_space<vmem>>, vector<8x128xf32>
    %62 = arith.truncf %61 : vector<8x128xf32> to vector<8x128xbf16>
    %c0_52 = arith.constant 0 : index
    %c0_53 = arith.constant 0 : index
    %63 = vector.load %arg10[%c0_52, %c0_53] : memref<128x128xbf16, #tpu.memory_space<vmem>>, vector<128x128xbf16>
    %cst_54 = arith.constant dense<0.000000e+00> : vector<8x128xf32>
    %64 = tpu.matmul %62, %63, %cst_54 {dimension_numbers = #tpu.dot_dimension_numbers<[1], [0], [0], [1], [0, 0, 1, 1], [], []>} : vector<8x128xbf16>, vector<128x128xbf16>, vector<8x128xf32> -> vector<8x128xf32>
    %65 = arith.truncf %60 : vector<8x128xf32> to vector<8x128xbf16>
    %c0_55 = arith.constant 0 : index
    %c0_56 = arith.constant 0 : index
    %66 = vector.load %arg11[%c0_55, %c0_56] : memref<128x128xbf16, #tpu.memory_space<vmem>>, vector<128x128xbf16>
    %cst_57 = arith.constant dense<0.000000e+00> : vector<8x128xf32>
    %67 = tpu.matmul %65, %66, %cst_57 {dimension_numbers = #tpu.dot_dimension_numbers<[1], [0], [0], [1], [0, 0, 1, 1], [], []>} : vector<8x128xbf16>, vector<128x128xbf16>, vector<8x128xf32> -> vector<8x128xf32>
    %68 = arith.addf %64, %67 : vector<8x128xf32>
    %c0_58 = arith.constant 0 : index
    %c0_59 = arith.constant 0 : index
    %69 = vector.load %arg12[%c0_58, %c0_59] : memref<1x128xf32, #tpu.memory_space<vmem>>, vector<1x128xf32>
    %70 = vector.broadcast %69 : vector<1x128xf32> to vector<8x128xf32>
    %71 = arith.addf %68, %70 : vector<8x128xf32>
    %72 = tpu.iota {dimensions = array<i32: 1>} : vector<8x128xi32>
    %cst_60 = arith.constant 0.000000e+00 : f32
    %73 = vector.broadcast %cst_60 : f32 to vector<8x128xf32>
    %74 = arith.cmpf ogt, %52, %73 : vector<8x128xf32>
    %c8_i32 = arith.constant 8 : i32
    %75 = vector.broadcast %c8_i32 : i32 to vector<8x128xi32>
    %76 = arith.cmpi sge, %72, %75 : vector<8x128xi32>
    %77 = arith.ori %74, %76 : vector<8x128xi1>
    %cst_61 = arith.constant -1.000000e+06 : f32
    %78 = vector.broadcast %cst_61 : f32 to vector<8x128xf32>
    %79 = arith.select %77, %71, %78 : vector<8x128xi1>, vector<8x128xf32>
    %c0_62 = arith.constant 0 : index
    %c0_63 = arith.constant 0 : index
    %80 = vector.load %arg13[%c0_62, %c0_63] : memref<8x128xf32, #tpu.memory_space<vmem>>, vector<8x128xf32>
    tpu.vector_store %arg13[%c0_62, %c0_63], %79 {strides = array<i32>} : memref<8x128xf32, #tpu.memory_space<vmem>>, vector<8x128xf32>,
    return
  }
  func.func @transform_0(%arg0: i32, %arg1: memref<8xi32, #tpu.memory_space<smem>>) -> (i32, i32) {
    %c0_i32 = arith.constant 0 : i32
    %c0_i32_0 = arith.constant 0 : i32
    %c0_i32_1 = arith.constant 0 : i32
    return %c0_i32, %c0_i32_0 : i32, i32
  }
  func.func @transform_1(%arg0: i32, %arg1: memref<8xi32, #tpu.memory_space<smem>>) -> (i32, i32) {
    %c0_i32 = arith.constant 0 : i32
    %c0_i32_0 = arith.constant 0 : i32
    %c0_i32_1 = arith.constant 0 : i32
    return %c0_i32, %c0_i32_0 : i32, i32
  }
  func.func @transform_2(%arg0: i32, %arg1: memref<8xi32, #tpu.memory_space<smem>>) -> (i32, i32) {
    %c0_i32 = arith.constant 0 : i32
    %c0_i32_0 = arith.constant 0 : i32
    %c0_i32_1 = arith.constant 0 : i32
    return %c0_i32, %c0_i32_0 : i32, i32
  }
  func.func @transform_3(%arg0: i32, %arg1: memref<8xi32, #tpu.memory_space<smem>>) -> (i32, i32) {
    %c0_i32 = arith.constant 0 : i32
    %c0_i32_0 = arith.constant 0 : i32
    %c0_i32_1 = arith.constant 0 : i32
    return %c0_i32, %c0_i32_0 : i32, i32
  }
  func.func @transform_4(%arg0: i32, %arg1: memref<8xi32, #tpu.memory_space<smem>>) -> (i32, i32) {
    %c0_i32 = arith.constant 0 : i32
    %c0_i32_0 = arith.constant 0 : i32
    %c0_i32_1 = arith.constant 0 : i32
    return %c0_i32, %c0_i32_0 : i32, i32
  }
  func.func @transform_5(%arg0: i32, %arg1: memref<8xi32, #tpu.memory_space<smem>>) -> (i32, i32) {
    %c0_i32 = arith.constant 0 : i32
    %c0_i32_0 = arith.constant 0 : i32
    %c0_i32_1 = arith.constant 0 : i32
    return %c0_i32, %c0_i32_0 : i32, i32
  }
  func.func @transform_6(%arg0: i32, %arg1: memref<8xi32, #tpu.memory_space<smem>>) -> (i32, i32) {
    %c0_i32 = arith.constant 0 : i32
    %c0_i32_0 = arith.constant 0 : i32
    %c0_i32_1 = arith.constant 0 : i32
    return %c0_i32, %c0_i32_0 : i32, i32
  }
  func.func @transform_7(%arg0: i32, %arg1: memref<8xi32, #tpu.memory_space<smem>>) -> (i32, i32) {
    %c0_i32 = arith.constant 0 : i32
    %c0_i32_0 = arith.constant 0 : i32
    %c0_i32_1 = arith.constant 0 : i32
    return %c0_i32, %c0_i32_0 : i32, i32
  }
  func.func @transform_8(%arg0: i32, %arg1: memref<8xi32, #tpu.memory_space<smem>>) -> (i32, i32) {
    %c0_i32 = arith.constant 0 : i32
    %c0_i32_0 = arith.constant 0 : i32
    %c0_i32_1 = arith.constant 0 : i32
    return %c0_i32, %c0_i32_0 : i32, i32
  }
  func.func @transform_9(%arg0: i32, %arg1: memref<8xi32, #tpu.memory_space<smem>>) -> (i32, i32) {
    %c0_i32 = arith.constant 0 : i32
    %c0_i32_0 = arith.constant 0 : i32
    %c0_i32_1 = arith.constant 0 : i32
    return %c0_i32, %c0_i32_0 : i32, i32
  }
  func.func @transform_10(%arg0: i32, %arg1: memref<8xi32, #tpu.memory_space<smem>>) -> (i32, i32) {
    %c0_i32 = arith.constant 0 : i32
    %c0_i32_0 = arith.constant 0 : i32
    %c0_i32_1 = arith.constant 0 : i32
    return %c0_i32, %c0_i32_0 : i32, i32
  }
  func.func @transform_11(%arg0: i32, %arg1: memref<8xi32, #tpu.memory_space<smem>>) -> (i32, i32) {
    %c0_i32 = arith.constant 0 : i32
    %c0_i32_0 = arith.constant 0 : i32
    %c0_i32_1 = arith.constant 0 : i32
    return %c0_i32, %c0_i32_0 : i32, i32
  }
}

</mosaic_0001>

<bundles_post_ra>
// kernel: gnn_policy_forward.1
= control target key start
LH: loop header
LB: loop body
LE: loop exit
PB: predicated region body
PF: predicated region fallthrough
CT: control target
= control target key end

     0   :  { %s1274_s0 = inlined_call_operand.vmem [shape: s32[8], index: 0, kind: input, shape index: {}]   ;;  %s1275_s1 = inlined_call_operand.vmem [shape: bf16[16,16], index: 1, kind: input, shape index: {}]   ;;  %s1276_s2 = inlined_call_operand.vmem [shape: bf16[16,128], index: 2, kind: input, shape index: {}]   ;;  %s1277_s3 = inlined_call_operand.vmem [shape: f32[1,128], index: 3, kind: input, shape index: {}]   ;;  %s1278_s4 = inlined_call_operand.hbm [shape: bf16[128,128], index: 4, kind: input, shape index: {}]   ;;  %s1279_s5 = inlined_call_operand.vmem [shape: f32[1,128], index: 5, kind: input, shape index: {}]   ;;  %s1280_s6 = inlined_call_operand.vmem [shape: f32[8,128], index: 6, kind: input, shape index: {}]   ;;  %s1281_s7 = inlined_call_operand.hbm [shape: bf16[128,128], index: 7, kind: input, shape index: {}]   ;;  %s1282_s8 = inlined_call_operand.vmem [shape: f32[1,128], index: 8, kind: input, shape index: {}]   ;;  %s1283_s9 = inlined_call_operand.hbm [shape: bf16[128,128], index: 9, kind: input, shape index: {}]   ;;  %s1284_s10 = inlined_call_operand.hbm [shape: bf16[128,128], index: 10, kind: input, shape index: {}]   ;;  %s1285_s11 = inlined_call_operand.vmem [shape: f32[1,128], index: 11, kind: input, shape index: {}]   ;;  %s1286_s12 = inlined_call_operand.vmem [shape: f32[8,128], index: 12, kind: output, shape index: {}]  }
   0x1   :  { %s17_s23 = sshll.u32 %s1274_s0, 4  ;;  %s18_s23 = int_to_ptr.vmem [resolvable:$true] %s17_s23 }
   0x2   :  { %s938_s24 = scalar_lea.vmem %s18_s23, 16  ;;  %p943_p1 = scmp.lt.s32.totalorder %s18_s23, %s18_s23 }
   0x3   :  { %p939_p0 = scmp.ne.s32.totalorder %s18_s23, %s938_s24  ;;  %p944_p2 = scmp.lt.s32.totalorder %s938_s24, %s938_s24 }
   0x5   :  { %p945_p3 = por %p944_p2, %p943_p1 }
   0x7   :  { %p946_p4 = pnand %p945_p3, %p939_p0 }
   0x9   :  { %949 = shalt.err (!%p946_p4)  }
   0xa   :  { %s1046_s25 = smov [#allocation5]  }
   0xb   :  { %20 = dma.vmem_to_smem %s18_s23, 16, %s1046_s25, [#allocation4] }
   0xc   :  { %1038 = dma.done.wait [#allocation4], 16 }
   0xd   :  { %1039 = vsyncadd [#allocation4], 4294967280 }
   0xe   :  { %22 = sfence }
   0xf   :  { %23 = vsyncpa [#allocation7], 0 }
  0x10   :  { %24 = vsyncpa [#allocation9], 0 }
  0x11   :  { %25 = vsyncpa [#allocation12], 0  ;;  %s1047_s26 = smov [#allocation8]   ;;  %s1048_s28 = smov [#allocation6]  }
  0x12   :  { %s53_s27 = sshll.u32 %s1047_s26, 4  ;;  %s37_s0 = sshll.u32 %s1048_s28, 4  ;;  %s54_s27 = int_to_ptr.vmem [resolvable:$true] %s53_s27  ;;  %s1123_s0 = int_to_ptr.vmem [resolvable:$true] %s37_s0 }
  0x13   :  { %s950_s13 = scalar_lea.hbm %s1281_s7, 1024 }
  0x14   :  { %p951_p5 = scmp.ne.s32.totalorder %s1281_s7, %s950_s13  ;;  %p954_p6 = scmp.lt.u32.totalorder %s950_s13, %s1281_s7 }
  0x16   :  { %p956_p7 = pnand %p954_p6, %p951_p5 }
  0x18   :  { %959 = shalt.err (!%p956_p7)
}
  0x19   :  { %s960_s18 = scalar_lea.vmem %s54_s27, 1024  ;;  %p965_p9 = scmp.lt.s32.totalorder %s54_s27, %s54_s27 }
  0x1a   :  { %p961_p8 = scmp.ne.s32.totalorder %s54_s27, %s960_s18  ;;  %p966_p10 = scmp.lt.s32.totalorder %s960_s18, %s960_s18 }
  0x1c   :  { %p967_p11 = por %p966_p10, %p965_p9 }
  0x1e   :  { %p968_p12 = pnand %p967_p11, %p961_p8 }
  0x20   :  { %971 = shalt.err (!%p968_p12)
}
  0x21   :  { %s1049_s19 = smov 64   ;;  %s1050_s20 = smov 4  }
  0x22   :  { %59 = dma.hbm_to_vmem [thread:$0]  %s1281_s7, 1024, %s54_s27, [#allocation9], %s1049_s19, %s1049_s19, %s1050_s20  }
  0x23   :  { %s972_s25 = scalar_lea.hbm %s1278_s4, 1024 }
  0x24   :  { %p973_p13 = scmp.ne.s32.totalorder %s1278_s4, %s972_s25  ;;  %p976_p0 = scmp.lt.u32.totalorder %s972_s25, %s1278_s4 }
  0x26   :  { %p978_p1 = pnand %p976_p0, %p973_p13 }
  0x28   :  { %981 = shalt.err (!%p978_p1)
}
  0x29   :  { %s982_s13 = scalar_lea.vmem %s1123_s0, 1024  ;;  %p987_p3 = scmp.lt.s32.totalorder %s1123_s0, %s1123_s0 }
  0x2a   :  { %p983_p2 = scmp.ne.s32.totalorder %s1123_s0, %s982_s13  ;;  %p988_p4 = scmp.lt.s32.totalorder %s982_s13, %s982_s13 }
  0x2c   :  { %p989_p5 = por %p988_p4, %p987_p3 }
  0x2e   :  { %p990_p6 = pnand %p989_p5, %p983_p2 }
  0x30   :  { %993 = shalt.err (!%p990_p6)
}
  0x31   :  { %43 = dma.hbm_to_vmem [thread:$0]  %s1278_s4, 1024, %s1123_s0, [#allocation7], %s1049_s19, %s1049_s19, %s1050_s20  }
  0x32   :  { %s1051_s14 = smov [#allocation10]   ;;  %s1052_s16 = smov [#allocation11]  }
  0x33   :  { %s67_s15 = sshll.u32 %s1051_s14, 4  ;;  %s79_s17 = sshll.u32 %s1052_s16, 4  ;;  %s68_s15 = int_to_ptr.vmem [resolvable:$true] %s67_s15  ;;  %s1160_s17 = int_to_ptr.vmem [resolvable:$true] %s79_s17 }
  0x34   :  { %s994_s22 = scalar_lea.hbm %s1283_s9, 1024 }
  0x35   :  { %p995_p7 = scmp.ne.s32.totalorder %s1283_s9, %s994_s22  ;;  %p998_p8 = scmp.lt.u32.totalorder %s994_s22, %s1283_s9 }
  0x37   :  { %p1000_p9 = pnand %p998_p8, %p995_p7 }
  0x39   :  { %1003 = shalt.err (!%p1000_p9)
}
  0x3a   :  { %s1004_s4 = scalar_lea.vmem %s68_s15, 1024  ;;  %p1009_p11 = scmp.lt.s32.totalorder %s68_s15, %s68_s15 }
  0x3b   :  { %p1005_p10 = scmp.ne.s32.totalorder %s68_s15, %s1004_s4  ;;  %p1010_p12 = scmp.lt.s32.totalorder %s1004_s4, %s1004_s4 }
  0x3d   :  { %p1011_p13 = por %p1010_p12, %p1009_p11 }
  0x3f   :  { %p1012_p0 = pnand %p1011_p13, %p1005_p10 }
  0x41   :  { %1015 = shalt.err (!%p1012_p0)
}
  0x42   :  { %73 = dma.hbm_to_vmem [thread:$0]  %s1283_s9, 1024, %s68_s15, [#allocation9], %s1049_s19, %s1049_s19, %s1050_s20  }
  0x43   :  { %s1016_s13 = scalar_lea.hbm %s1284_s10, 1024 }
  0x44   :  { %p1017_p1 = scmp.ne.s32.totalorder %s1284_s10, %s1016_s13  ;;  %p1020_p2 = scmp.lt.u32.totalorder %s1016_s13, %s1284_s10 }
  0x46   :  { %p1022_p3 = pnand %p1020_p2, %p1017_p1 }
  0x48   :  { %1025 = shalt.err (!%p1022_p3)
}
  0x49   :  { %s1026_s18 = scalar_lea.vmem %s1160_s17, 1024  ;;  %p1031_p5 = scmp.lt.s32.totalorder %s1160_s17, %s1160_s17 }
  0x4a   :  { %p1027_p4 = scmp.ne.s32.totalorder %s1160_s17, %s1026_s18  ;;  %p1032_p6 = scmp.lt.s32.totalorder %s1026_s18, %s1026_s18 }
  0x4c   :  { %p1033_p7 = por %p1032_p6, %p1031_p5 }
  0x4e   :  { %p1034_p8 = pnand %p1033_p7, %p1027_p4 }
  0x50   :  { %1037 = shalt.err (!%p1034_p8)
}
  0x51   :  { %85 = dma.hbm_to_vmem [thread:$0]  %s1284_s10, 1024, %s1160_s17, [#allocation12], %s1049_s19, %s1049_s19, %s1050_s20  }
  0x52   :  { %1040 = dma.done.wait [#allocation7], 1024  }
  0x53   :  { %1041 = vsyncadd [#allocation7], 4294966272 }
  0x54   :  { %1042 = dma.done.wait [#allocation9], 2048  }
  0x55   :  { %1043 = vsyncadd [#allocation9], 4294965248 }
  0x56   :  { %1044 = dma.done.wait [#allocation12], 1024  }
  0x57   :  { %1045 = vsyncadd [#allocation12], 4294966272  ;;  %v1053_v0 = vmov 0.0   ;;  %vm1054_vm0 = vmmov 0   ;;  %v904_v1 = vld [vmem:[%s1276_s2] sm:$0xff]   ;;  %vm123_vm1 = vcmask 130048  }
  0x58   :  { %803 = vmatprep.subr.bf16.mxu1 %v1053_v0  ;;  %805 = vmatprep.mubr.msk.bf16.mxu1 %vm1054_vm0, %v1053_v0  ;;  %v905_v2 = vld [vmem:[%s1275_s1] sm:$0xff]   ;;  %v906_v3 = vld [vmem:[#allocation6] sm:$0xff]   ;;  %v908_v5 = vld [vmem:[#allocation6 + $0x10] sm:$0xff]   ;;  %s329_s23 = sld [smem:[#allocation5]]  ;;  %s730_s24 = sld [smem:[#allocation5 + $0x1]] }
  0x59   :  { %829 = vmatprep.subr.bf16.mxu0 %v1053_v0  ;;  %831 = vmatprep.mubr.msk.bf16.mxu0 %vm1054_vm0, %v1053_v0  ;;  %v907_v4 = vld [vmem:[#allocation6 + $0x8] sm:$0xff]   ;;  %v909_v6 = vld [vmem:[#allocation6 + $0x18] sm:$0xff]   ;;  %v910_v7 = vld [vmem:[#allocation6 + $0x20] sm:$0xff]   ;;  %s731_s25 = sld [smem:[#allocation5 + $0x2]]  ;;  %s732_s26 = sld [smem:[#allocation5 + $0x3]] }
  0x5a   :  { %804 = vmatpush3.bf16.msra.mxu1 %v904_v1  ;;  %v911_v8 = vld [vmem:[#allocation6 + $0x28] sm:$0xff]   ;;  %v912_v9 = vld [vmem:[#allocation6 + $0x30] sm:$0xff]   ;;  %v913_v10 = vld [vmem:[#allocation6 + $0x38] sm:$0xff]   ;;  %s733_s4 = sld [smem:[#allocation5 + $0x4]]  ;;  %s734_s0 = sld [smem:[#allocation5 + $0x5]] }
  0x5b   :  { %809 = vmatprep.subr.bf16.mxu1 %v1053_v0  ;;  %v716_v11 = vld [vmem:[%s1277_s3] ss:$0 sm:$0xff]  ;;  %v914_v26 = vld [vmem:[#allocation8] sm:$0xff]   ;;  %v916_v28 = vld [vmem:[#allocation8 + $0x10] sm:$0xff]   ;;  %s735_s28 = sld [smem:[#allocation5 + $0x6]]  ;;  %s736_s29 = sld [smem:[#allocation5 + $0x7]] }
  0x5c   :  { %v915_v27 = vld [vmem:[#allocation8 + $0x8] sm:$0xff]   ;;  %v917_v29 = vld [vmem:[#allocation8 + $0x18] sm:$0xff]   ;;  %v918_v30 = vld [vmem:[#allocation8 + $0x20] sm:$0xff]  }
  0x5d   :  { %806 = vmatmul.mubr.msk.bf16.vlgmr.msra.gmra.mrb[0].mxu1 %vm123_vm1, %v905_v2  ;;  %v919_v31 = vld [vmem:[#allocation8 + $0x28] sm:$0xff]   ;;  %v920_v32 = vld [vmem:[#allocation8 + $0x30] sm:$0xff]   ;;  %v921_v33 = vld [vmem:[#allocation8 + $0x38] sm:$0xff]  }
  0x5e   :  { %810 = vmatpush3.bf16.msra.mxu1 %v906_v3  ;;  %825 = vmatprep.mubr.msk.bf16.mxu1 %vm1054_vm0, %v1053_v0  ;;  %v1239_v34 = vld [vmem:[%s1280_s6] sm:$0xff]  ;;  %v922_v36 = vld [vmem:[#allocation10] sm:$0xff]   ;;  %v924_v38 = vld [vmem:[#allocation10 + $0x10] sm:$0xff]   ;;  %s330_s30 = scalar_lea.vmem [#allocation2], %s329_s23 }
  0x5f   :  { %811 = vmatprep.subr.bf16.mxu1 %v1053_v0  ;;  %v362_v35 = vpack.c.bf16 %v1239_v34, %v1239_v34  ;;  %v923_v37 = vld [vmem:[#allocation10 + $0x8] sm:$0xff]   ;;  %v925_v39 = vld [vmem:[#allocation10 + $0x18] sm:$0xff]   ;;  %v926_v40 = vld [vmem:[#allocation11] sm:$0xff]   ;;  %s338_s13 = scalar_lea.vmem [#allocation2], %s731_s25  ;;  %s342_s7 = scalar_lea.vmem [#allocation2], %s732_s26  ;;  %vm696_vm2 = vcmp.gt.f32.partialorder %v1239_v34, 0.0 }
  0x60   :  { %v927_v41 = vld [vmem:[#allocation10 + $0x20] sm:$0xff]   ;;  %v928_v42 = vld [vmem:[#allocation11 + $0x8] sm:$0xff]   ;;  %v930_v44 = vld [vmem:[#allocation11 + $0x10] sm:$0xff]   ;;  %s346_s27 = scalar_lea.vmem [#allocation2], %s733_s4  ;;  %s350_s14 = scalar_lea.vmem [#allocation2], %s734_s0 }
  0x61   :  { %v929_v43 = vld [vmem:[#allocation10 + $0x28] sm:$0xff]   ;;  %v931_v45 = vld [vmem:[#allocation10 + $0x30] sm:$0xff]   ;;  %v932_v46 = vld [vmem:[#allocation11 + $0x18] sm:$0xff]   ;;  %s354_s16 = scalar_lea.vmem [#allocation2], %s735_s28  ;;  %s358_s18 = scalar_lea.vmem [#allocation2], %s736_s29 }
  0x62   :  { %812 = vmatpush3.bf16.msra.mxu1 %v907_v4  ;;  %v933_v47 = vld [vmem:[#allocation10 + $0x38] sm:$0xff]   ;;  %v934_v48 = vld [vmem:[#allocation11 + $0x20] sm:$0xff]   ;;  %v935_v49 = vld [vmem:[#allocation11 + $0x28] sm:$0xff]  }
  0x63   :  { %813 = vmatprep.subr.bf16.mxu1 %v1053_v0  ;;  %v936_v50 = vld [vmem:[#allocation11 + $0x30] sm:$0xff]   ;;  %v937_v51 = vld [vmem:[#allocation11 + $0x38] sm:$0xff]   ;;  %v728_v52 = vld [vmem:[%s1279_s5] ss:$0 sm:$0xff]  ;;  %s334_s5 = scalar_lea.vmem [#allocation2], %s730_s24 }
  0x66   :  { %814 = vmatpush3.bf16.msra.mxu1 %v908_v5 }
  0x67   :  { %815 = vmatprep.subr.bf16.mxu1 %v1053_v0 }
  0x6a   :  { %816 = vmatpush3.bf16.msra.mxu1 %v909_v6 }
  0x6b   :  { %817 = vmatprep.subr.bf16.mxu1 %v1053_v0 }
  0x6e   :  { %818 = vmatpush3.bf16.msra.mxu1 %v910_v7  ;;  %v737_v7 = vld [vmem:[%s1282_s8] ss:$0 sm:$0xff] }
  0x6f   :  { %819 = vmatprep.subr.bf16.mxu1 %v1053_v0 }
  0x72   :  { %820 = vmatpush3.bf16.msra.mxu1 %v911_v8 }
  0x73   :  { %821 = vmatprep.subr.bf16.mxu1 %v1053_v0 }
  0x76   :  { %822 = vmatpush3.bf16.msra.mxu1 %v912_v9 }
  0x77   :  { %823 = vmatprep.subr.bf16.mxu1 %v1053_v0 }
  0x7a   :  { %824 = vmatpush3.bf16.msra.mxu1 %v913_v10 }
  0x7b   :  { %855 = vmatprep.subr.bf16.mxu1 %v1053_v0 }
 0x130   :  { %v161_v12 = vpop.f32.mrb[0].mxu1 }
 0x131   :  { %v162_v13 = vadd.f32 %v716_v11, %v161_v12  ;;  %v807_v14 = vpop.f32.mrb[1].mxu1 }
 0x132   :  { %v164_v15 = vpop.f32.mrb[2].mxu1 }
 0x133   :  { %v165_v16 = vadd.f32 %v716_v11, %v164_v15  ;;  %v808_v17 = vpop.f32.mrb[3].mxu1  ;;  %v168_v18 = vmax.f32 %v162_v13, 0.0 }
 0x135   :  { %v169_v19 = vmax.f32 %v165_v16, 0.0 }
 0x137   :  { %v170_v20 = vpack.c.bf16 %v169_v19, %v168_v18  ;;  %v694_v19 = vlaneseq }
 0x139   :  { %826 = vmatmul.mubr.bf16.vlgmr.msra.gmra.mrb[4].mxu1 %v170_v20  ;;  %v695_v20 = vand.u32 127, %v694_v19 }
 0x13a   :  { %871 = vmatprep.mubr.msk.bf16.mxu1 %vm1054_vm0, %v1053_v0  ;;  %856 = vmatpush3.bf16.msra.mxu1 %v926_v40 }
 0x13b   :  { %857 = vmatprep.subr.bf16.mxu1 %v1053_v0  ;;  %vm697_vm3 = vcmp.ge.s32.totalorder %v695_v20, 8 }
 0x13c   :  { %vm698_vm4 = vmor %vm696_vm2, %vm697_vm3 }
 0x13e   :  { %858 = vmatpush3.bf16.msra.mxu1 %v928_v42 }
 0x13f   :  { %859 = vmatprep.subr.bf16.mxu1 %v1053_v0 }
 0x142   :  { %860 = vmatpush3.bf16.msra.mxu1 %v930_v44 }
 0x143   :  { %861 = vmatprep.subr.bf16.mxu1 %v1053_v0 }
 0x146   :  { %862 = vmatpush3.bf16.msra.mxu1 %v932_v46 }
 0x147   :  { %863 = vmatprep.subr.bf16.mxu1 %v1053_v0 }
 0x14a   :  { %864 = vmatpush3.bf16.msra.mxu1 %v934_v48 }
 0x14b   :  { %865 = vmatprep.subr.bf16.mxu1 %v1053_v0 }
 0x14e   :  { %866 = vmatpush3.bf16.msra.mxu1 %v935_v49 }
 0x14f   :  { %867 = vmatprep.subr.bf16.mxu1 %v1053_v0 }
 0x152   :  { %868 = vmatpush3.bf16.msra.mxu1 %v936_v50 }
 0x153   :  { %869 = vmatprep.subr.bf16.mxu1 %v1053_v0 }
 0x156   :  { %870 = vmatpush3.bf16.msra.mxu1 %v937_v51 }
 0x20c   :  { %v269_v21 = vpop.f32.mrb[4].mxu1 }
 0x20d   :  { %v827_v22 = vpop.f32.mrb[5].mxu1 }
 0x20e   :  { %v272_v23 = vpop.f32.mrb[6].mxu1  ;;  %v762_v22 = vld [vmem:[%s1285_s11] ss:$0 sm:$0xff] }
 0x20f   :  { %v276_v24 = vpack.c.bf16 %v272_v23, %v269_v21  ;;  %v828_v25 = vpop.f32.mrb[7].mxu1 }
 0x211   :  { %830 = vmatpush3.bf16.msra.mxu0 %v276_v24 }
 0x212   :  { %835 = vmatprep.subr.bf16.mxu0 %v1053_v0 }
 0x214   :  { %832 = vmatmul.mubr.msk.bf16.vlgmr.msra.gmra.mrb[0].mxu0 %vm123_vm1, %v905_v2 }
 0x215   :  { %836 = vmatpush3.bf16.msra.mxu0 %v914_v26  ;;  %851 = vmatprep.mubr.msk.bf16.mxu0 %vm1054_vm0, %v1053_v0 }
 0x216   :  { %837 = vmatprep.subr.bf16.mxu0 %v1053_v0 }
 0x219   :  { %838 = vmatpush3.bf16.msra.mxu0 %v915_v27 }
 0x21a   :  { %839 = vmatprep.subr.bf16.mxu0 %v1053_v0 }
 0x21d   :  { %840 = vmatpush3.bf16.msra.mxu0 %v916_v28 }
 0x21e   :  { %841 = vmatprep.subr.bf16.mxu0 %v1053_v0 }
 0x221   :  { %842 = vmatpush3.bf16.msra.mxu0 %v917_v29 }
 0x222   :  { %843 = vmatprep.subr.bf16.mxu0 %v1053_v0 }
 0x225   :  { %844 = vmatpush3.bf16.msra.mxu0 %v918_v30 }
 0x226   :  { %845 = vmatprep.subr.bf16.mxu0 %v1053_v0 }
 0x229   :  { %846 = vmatpush3.bf16.msra.mxu0 %v919_v31 }
 0x22a   :  { %847 = vmatprep.subr.bf16.mxu0 %v1053_v0 }
 0x22d   :  { %848 = vmatpush3.bf16.msra.mxu0 %v920_v32 }
 0x22e   :  { %849 = vmatprep.subr.bf16.mxu0 %v1053_v0 }
 0x231   :  { %850 = vmatpush3.bf16.msra.mxu0 %v921_v33 }
 0x232   :  { %875 = vmatprep.subr.bf16.mxu0 %v1053_v0 }
 0x234   :  { %852 = vmatmul.mubr.bf16.vlgmr.msra.gmra.mrb[4].mxu0 %v362_v35 }
 0x235   :  { %876 = vmatpush3.bf16.msra.mxu0 %v922_v36  ;;  %891 = vmatprep.mubr.msk.bf16.mxu0 %vm1054_vm0, %v1053_v0 }
 0x236   :  { %877 = vmatprep.subr.bf16.mxu0 %v1053_v0 }
 0x239   :  { %878 = vmatpush3.bf16.msra.mxu0 %v923_v37 }
 0x23a   :  { %879 = vmatprep.subr.bf16.mxu0 %v1053_v0 }
 0x23d   :  { %880 = vmatpush3.bf16.msra.mxu0 %v924_v38 }
 0x23e   :  { %881 = vmatprep.subr.bf16.mxu0 %v1053_v0 }
 0x241   :  { %882 = vmatpush3.bf16.msra.mxu0 %v925_v39 }
 0x242   :  { %883 = vmatprep.subr.bf16.mxu0 %v1053_v0 }
 0x245   :  { %884 = vmatpush3.bf16.msra.mxu0 %v927_v41 }
 0x246   :  { %885 = vmatprep.subr.bf16.mxu0 %v1053_v0 }
 0x249   :  { %886 = vmatpush3.bf16.msra.mxu0 %v929_v43 }
 0x24a   :  { %887 = vmatprep.subr.bf16.mxu0 %v1053_v0 }
 0x24d   :  { %888 = vmatpush3.bf16.msra.mxu0 %v931_v45 }
 0x24e   :  { %889 = vmatprep.subr.bf16.mxu0 %v1053_v0 }
 0x251   :  { %890 = vmatpush3.bf16.msra.mxu0 %v933_v47 }
 0x2e7   :  { %v318_v53 = vpop.f32.mrb[0].mxu0 }
 0x2e8   :  { %v319_v54 = vadd.f32 %v728_v52, %v318_v53  ;;  %v833_v55 = vpop.f32.mrb[1].mxu0 }
 0x2e9   :  { %v321_v56 = vpop.f32.mrb[2].mxu0 }
 0x2ea   :  { %v325_v57 = vmax.f32 %v319_v54, 0.0  ;;  %v322_v58 = vadd.f32 %v728_v52, %v321_v56  ;;  %v834_v59 = vpop.f32.mrb[3].mxu0 }
 0x2ec   :  { %327 = vst [vmem:[#allocation2] sm:$0xff] %v325_v57  ;;  %v326_v60 = vmax.f32 %v322_v58, 0.0 }
 0x2ee   :  { %328 = vst [vmem:[#allocation2 + $0x8] sm:$0xff] %v326_v60 }
 0x2f5   :  { %v331_v61 = vld [vmem:[%s330_s30] sm:$0x1] }
 0x2f6   :  { %v335_v62 = vld [vmem:[%s334_s5] sm:$0x1]  ;;  %332 = vst [vmem:[#allocation3] sm:$0x1] %v331_v61 }
 0x2f7   :  { %v339_v63 = vld [vmem:[%s338_s13] sm:$0x1]  ;;  %336 = vst [vmem:[#allocation3 + $0x1] sm:$0x1] %v335_v62 }
 0x2f8   :  { %340 = vst [vmem:[#allocation3 + $0x2] sm:$0x1] %v339_v63  ;;  %v343_v0 = vld [vmem:[%s342_s7] sm:$0x1] }
 0x2f9   :  { %v347_v1 = vld [vmem:[%s346_s27] sm:$0x1]  ;;  %344 = vst [vmem:[#allocation3 + $0x3] sm:$0x1] %v343_v0 }
 0x2fa   :  { %v351_v2 = vld [vmem:[%s350_s14] sm:$0x1]  ;;  %348 = vst [vmem:[#allocation3 + $0x4] sm:$0x1] %v347_v1 }
 0x2fb   :  { %352 = vst [vmem:[#allocation3 + $0x5] sm:$0x1] %v351_v2  ;;  %v355_v3 = vld [vmem:[%s354_s16] sm:$0x1] }
 0x2fc   :  { %v359_v4 = vld [vmem:[%s358_s18] sm:$0x1]  ;;  %356 = vst [vmem:[#allocation3 + $0x6] sm:$0x1] %v355_v3 }
 0x2fd   :  { %360 = vst [vmem:[#allocation3 + $0x7] sm:$0x1] %v359_v4 }
 0x304   :  { %v475_v5 = vld [vmem:[#allocation3] sm:$0xff] }
 0x305   :  { %v476_v6 = vpack.c.bf16 %v475_v5, %v475_v5 }
 0x307   :  { %892 = vmatmul.mubr.bf16.vlgmr.msra.gmra.mrb[8].mxu0 %v476_v6  ;;  %v468_v8 = vpop.f32.mrb[4].mxu0 }
 0x308   :  { %v469_v9 = vadd.f32 %v737_v7, %v468_v8  ;;  %v853_v10 = vpop.f32.mrb[5].mxu0 }
 0x309   :  { %v471_v11 = vpop.f32.mrb[6].mxu0 }
 0x30a   :  { %v474_v12 = vmax.f32 %v469_v9, 0.0  ;;  %v854_v13 = vpop.f32.mrb[7].mxu0 }
 0x30c   :  { %v493_v14 = vpack.c.bf16 %v474_v12, %v474_v12 }
 0x30e   :  { %872 = vmatmul.mubr.bf16.vlgmr.msra.gmra.mrb[8].mxu1 %v493_v14 }
 0x3da   :  { %v680_v15 = vpop.f32.mrb[8].mxu0 }
 0x3db   :  { %v893_v16 = vpop.f32.mrb[9].mxu0 }
 0x3dc   :  { %v683_v17 = vpop.f32.mrb[10].mxu0 }
 0x3dd   :  { %v894_v18 = vpop.f32.mrb[11].mxu0 }
 0x3e1   :  { %v592_v21 = vpop.f32.mrb[8].mxu1 }
 0x3e2   :  { %v681_v23 = vadd.f32 %v680_v15, %v592_v21  ;;  %v873_v24 = vpop.f32.mrb[9].mxu1 }
 0x3e3   :  { %v595_v25 = vpop.f32.mrb[10].mxu1 }
 0x3e4   :  { %v693_v26 = vadd.f32 %v762_v22, %v681_v23  ;;  %v874_v27 = vpop.f32.mrb[11].mxu1 }
 0x3e6   :  { %v699_v28 = vsel %vm698_vm4, %v693_v26, -1000000.0 }
 0x3e7   :  { %700 = vst [vmem:[%s1286_s12] sm:$0xff] %v699_v28 }
 0x3e8   :  { %705 = vsyncpa [#allocation7], 1 }
 0x3e9   :  { %706 = vsyncpa [#allocation9], 1 }
 0x3ea   :  { %707 = vsyncpa [#allocation12], 1 }

</bundles_post_ra>
